<compile_context>
chip_gen: v7x
topology: tpu7x:2x2x1
jax: 0.10.0
libtpu: 0.0.40
codegen_flags: <defaults>
</compile_context>

<pallas_src>
import functools

import jax
import jax.numpy as jnp
from jax import lax
from jax.experimental import pallas as pl
from jax.experimental.pallas import tpu as pltpu


def _round_up(x, m):
    return (x + m - 1) // m * m


def _reward_criterion_kernel(inp_ref, seq_ref, rew_ref, num_ref, den_ref,
                             acc_num, acc_den, *, seq_len, total, tile_rows,
                             width, inner_steps):
    p = pl.program_id(0)          # parallel partial (v7x megacore) axis
    i = pl.program_id(1)          # sequential batch-tile axis

    @pl.when(i == 0)
    def _init():
        acc_num[...] = jnp.zeros_like(acc_num)
        acc_den[...] = jnp.zeros_like(acc_den)

    inp = inp_ref[...].astype(jnp.float32)        # (TB, W) log-probs
    rew = rew_ref[...].astype(jnp.float32)        # (TB, W) rewards
    tok = (seq_ref[...] > 0).astype(jnp.float32)  # (TB, W) token-present flags

    # mask = 1 at the first position of every sequence, else (seq[t-1] > 0).
    # Each row packs width // seq_len sequences back to back, so a lane roll by
    # one plus a (col % seq_len == 0) override reproduces the shifted mask; the
    # circular wrap only ever lands on forced-1 columns and is overwritten.
    shifted = pltpu.roll(tok, shift=1, axis=1)                      # XLU (free slot)
    col = lax.broadcasted_iota(jnp.int32, tok.shape, 1)
    mask = jnp.where(col % seq_len == 0, jnp.float32(1.0), shifted)

    # Exclude wrapper padding (flat element index >= B*T) from num AND den.
    row = lax.broadcasted_iota(jnp.int32, tok.shape, 0)
    flat = ((p * inner_steps + i) * tile_rows + row) * width + col
    mask = jnp.where(flat < total, mask, jnp.float32(0.0))

    # Pure elementwise VPU accumulation; negate/divide applied once at the end.
    acc_num[...] += inp * rew * mask
    acc_den[...] += mask

    @pl.when(i == pl.num_programs(1) - 1)
    def _finalize():
        num_ref[...] = jnp.full(num_ref.shape, jnp.sum(acc_num[...]), jnp.float32)
        den_ref[...] = jnp.full(den_ref.shape, jnp.sum(acc_den[...]), jnp.float32)


def reward_criterion(inp, seq, reward, *, block_rows=2048, num_partials=2):
    """sum(-inp * reward * shifted_mask(seq)) / sum(shifted_mask(seq)) -> scalar.

    inp: (B, T) float log-probs, seq: (B, T) int token ids (0 == pad),
    reward: (B, T) float (per-token / broadcast reward).
    """
    B, T = inp.shape
    assert seq.shape == (B, T) and reward.shape == (B, T)
    total = B * T

    # Lane-dense merged view: pack G sequences per row so the lane axis is
    # ~128 wide (row-major dim-merge reshape -> no data movement in HBM).
    G = max(1, -(-128 // T))
    W = G * T
    R = -(-total // W)                                  # merged rows needed

    P = num_partials                                    # per-core partials (v7x)
    TB = _round_up(min(block_rows, _round_up(max(R, 1), 8)), 8)
    rows_per_part = _round_up(-(-R // P), TB)
    NB = rows_per_part // TB                            # inner grid steps
    R_pad = P * NB * TB
    pad = R_pad * W - total

    def _prep(x):
        flat = x.reshape(-1)
        if pad:
            flat = jnp.pad(flat, (0, pad))
        return flat.reshape(R_pad, W)

    inp2, seq2, rew2 = _prep(inp), _prep(seq), _prep(reward)

    kernel = functools.partial(
        _reward_criterion_kernel,
        seq_len=T, total=total, tile_rows=TB, width=W, inner_steps=NB)

    in_spec = pl.BlockSpec((TB, W), lambda p, i: (p * NB + i, 0))
    out_spec = pl.BlockSpec((1, 8, 128), lambda p, i: (p, 0, 0))

    num_out, den_out = pl.pallas_call(
        kernel,
        out_shape=(jax.ShapeDtypeStruct((P, 8, 128), jnp.float32),
                   jax.ShapeDtypeStruct((P, 8, 128), jnp.float32)),
        grid_spec=pltpu.PrefetchScalarGridSpec(
            num_scalar_prefetch=0,
            grid=(P, NB),
            in_specs=[in_spec, in_spec, in_spec],
            out_specs=[out_spec, out_spec],
            scratch_shapes=[pltpu.VMEM((TB, W), jnp.float32),
                            pltpu.VMEM((TB, W), jnp.float32)]),
        compiler_params=pltpu.CompilerParams(
            dimension_semantics=("parallel", "arbitrary"),
            vmem_limit_bytes=32 * 1024 * 1024),
    )(inp2, seq2, rew2)

    num = jnp.sum(num_out[:, 0, 0])
    den = jnp.sum(den_out[:, 0, 0])
    return -(num / den)


if __name__ == "__main__":
    def _reference(inp, seq, reward):
        B, T = inp.shape
        m = (seq > 0).astype(jnp.float32)
        m = jnp.concatenate([jnp.ones((B, 1), jnp.float32), m[:, :-1]], axis=1)
        return jnp.sum(-inp * reward * m) / jnp.sum(m)

    key = jax.random.PRNGKey(0)

    # Small shape consistent with the module's captioning inputs.
    k1, k2, k3, key = jax.random.split(key, 4)
    B, T = 4, 8
    inp = jax.random.normal(k1, (B, T), dtype=jnp.float32)
    seq = jax.random.randint(k2, (B, T), 0, 5, dtype=jnp.int32)
    reward = jax.random.normal(k3, (B, T), dtype=jnp.float32)

    out = jax.block_until_ready(reward_criterion(inp, seq, reward))
    ref = _reference(inp, seq, reward)
    assert jnp.allclose(out, ref, rtol=1e-4, atol=1e-5), (out, ref)

    # Second check exercising padding, multiple inner grid steps and both
    # parallel partial slices (block_rows deliberately forced small).
    k1, k2, k3, key = jax.random.split(key, 4)
    B2, T2 = 300, 8
    inp_b = jax.random.normal(k1, (B2, T2), dtype=jnp.float32)
    seq_b = jax.random.randint(k2, (B2, T2), 0, 5, dtype=jnp.int32)
    rew_b = jax.random.normal(k3, (B2, T2), dtype=jnp.float32)

    out_b = jax.block_until_ready(
        reward_criterion(inp_b, seq_b, rew_b, block_rows=8))
    ref_b = _reference(inp_b, seq_b, rew_b)
    assert jnp.allclose(out_b, ref_b, rtol=1e-4, atol=1e-5), (out_b, ref_b)

    print("KERNEL_OK")
</pallas_src>

<mosaic_0001>
module attributes {stable_mosaic.version = 11 : i64} {
  func.func @_reward_criterion_kernel(%arg0: i32, %arg1: i32, %arg2: memref<8x128xf32, #tpu.memory_space<vmem>>, %arg3: memref<8x128xi32, #tpu.memory_space<vmem>>, %arg4: memref<8x128xf32, #tpu.memory_space<vmem>>, %arg5: memref<1x8x128xf32, #tpu.memory_space<vmem>>, %arg6: memref<1x8x128xf32, #tpu.memory_space<vmem>>, %arg7: memref<8x128xf32, #tpu.memory_space<vmem>>, %arg8: memref<8x128xf32, #tpu.memory_space<vmem>>) attributes {dimension_semantics = [#tpu.dimension_semantics<parallel>, #tpu.dimension_semantics<arbitrary>], iteration_bounds = array<i64: 2, 1>, scalar_prefetch = 0 : i64, scratch_operands = 2 : i64, tpu.core_type = #tpu.core_type<tc>, window_params = [{transform_indices = @transform_0, window_bounds = array<i64: 8, 128>}, {transform_indices = @transform_1, window_bounds = array<i64: 8, 128>}, {transform_indices = @transform_2, window_bounds = array<i64: 8, 128>}, {transform_indices = @transform_3, window_bounds = array<i64: 1, 8, 128>}, {transform_indices = @transform_4, window_bounds = array<i64: 1, 8, 128>}]} {
    %c0_i32 = arith.constant 0 : i32
    %0 = arith.cmpi eq, %arg1, %c0_i32 : i32
    %1 = arith.extui %0 : i1 to i32
    %c0_i32_0 = arith.constant 0 : i32
    %2 = arith.cmpi ne, %1, %c0_i32_0 : i32
    scf.if %2 {
      %cst_26 = arith.constant 0.000000e+00 : f32
      %56 = vector.broadcast %cst_26 : f32 to vector<8x128xf32>
      %c0_27 = arith.constant 0 : index
      %c0_28 = arith.constant 0 : index
      %57 = vector.load %arg7[%c0_27, %c0_28] : memref<8x128xf32, #tpu.memory_space<vmem>>, vector<8x128xf32>
      tpu.vector_store %arg7[%c0_27, %c0_28], %56 {strides = array<i32>} : memref<8x128xf32, #tpu.memory_space<vmem>>, vector<8x128xf32>,
      %cst_29 = arith.constant 0.000000e+00 : f32
      %58 = vector.broadcast %cst_29 : f32 to vector<8x128xf32>
      %c0_30 = arith.constant 0 : index
      %c0_31 = arith.constant 0 : index
      %59 = vector.load %arg8[%c0_30, %c0_31] : memref<8x128xf32, #tpu.memory_space<vmem>>, vector<8x128xf32>
      tpu.vector_store %arg8[%c0_30, %c0_31], %58 {strides = array<i32>} : memref<8x128xf32, #tpu.memory_space<vmem>>, vector<8x128xf32>,
    } else {
    }
    %c0 = arith.constant 0 : index
    %c0_1 = arith.constant 0 : index
    %3 = vector.load %arg2[%c0, %c0_1] : memref<8x128xf32, #tpu.memory_space<vmem>>, vector<8x128xf32>
    %c0_2 = arith.constant 0 : index
    %c0_3 = arith.constant 0 : index
    %4 = vector.load %arg4[%c0_2, %c0_3] : memref<8x128xf32, #tpu.memory_space<vmem>>, vector<8x128xf32>
    %c0_4 = arith.constant 0 : index
    %c0_5 = arith.constant 0 : index
    %5 = vector.load %arg3[%c0_4, %c0_5] : memref<8x128xi32, #tpu.memory_space<vmem>>, vector<8x128xi32>
    %c0_i32_6 = arith.constant 0 : i32
    %6 = vector.broadcast %c0_i32_6 : i32 to vector<8x128xi32>
    %7 = arith.cmpi sgt, %5, %6 : vector<8x128xi32>
    %8 = arith.extui %7 : vector<8x128xi1> to vector<8x128xi32>
    %9 = arith.sitofp %8 : vector<8x128xi32> to vector<8x128xf32>
    %c1_i32 = arith.constant 1 : i32
    %10 = tpu.dynamic_rotate %9 by %c1_i32 dim 1 : vector<8x128xf32>, i32 -> vector<8x128xf32>
    %11 = tpu.iota {dimensions = array<i32: 1>} : vector<8x128xi32>
    %c8_i32 = arith.constant 8 : i32
    %c0_i32_7 = arith.constant 0 : i32
    %12 = arith.cmpi eq, %c8_i32, %c0_i32_7 : i32
    %c1_i32_8 = arith.constant 1 : i32
    %13 = arith.select %12, %c1_i32_8, %c8_i32 : i32
    %14 = vector.broadcast %13 : i32 to vector<8x128xi32>
    %15 = arith.remsi %11, %14 : vector<8x128xi32>
    %c0_i32_9 = arith.constant 0 : i32
    %16 = vector.broadcast %c0_i32_9 : i32 to vector<8x128xi32>
    %17 = arith.cmpi ne, %15, %16 : vector<8x128xi32>
    %c0_i32_10 = arith.constant 0 : i32
    %18 = vector.broadcast %c0_i32_10 : i32 to vector<8x128xi32>
    %19 = arith.cmpi slt, %15, %18 : vector<8x128xi32>
    %c0_i32_11 = arith.constant 0 : i32
    %20 = arith.cmpi slt, %13, %c0_i32_11 : i32
    %21 = vector.broadcast %20 : i1 to vector<8x128xi1>
    %22 = vector.broadcast %21 : vector<8x128xi1> to vector<8x128xi1>
    %23 = arith.xori %19, %22 : vector<8x128xi1>
    %24 = arith.andi %23, %17 : vector<8x128xi1>
    %25 = vector.broadcast %13 : i32 to vector<8x128xi32>
    %26 = arith.addi %15, %25 : vector<8x128xi32>
    %27 = arith.select %24, %26, %15 : vector<8x128xi1>, vector<8x128xi32>
    %c0_i32_12 = arith.constant 0 : i32
    %28 = vector.broadcast %c0_i32_12 : i32 to vector<8x128xi32>
    %29 = arith.cmpi eq, %27, %28 : vector<8x128xi32>
    %cst = arith.constant 1.000000e+00 : f32
    %30 = vector.broadcast %cst : f32 to vector<8x128xf32>
    %31 = arith.select %29, %30, %10 : vector<8x128xi1>, vector<8x128xf32>
    %32 = tpu.iota {dimensions = array<i32: 0>} : vector<8x128xi32>
    %c1_i32_13 = arith.constant 1 : i32
    %33 = arith.muli %arg0, %c1_i32_13 : i32
    %34 = arith.addi %33, %arg1 : i32
    %c8_i32_14 = arith.constant 8 : i32
    %35 = arith.muli %34, %c8_i32_14 : i32
    %36 = vector.broadcast %35 : i32 to vector<8x128xi32>
    %37 = arith.addi %36, %32 : vector<8x128xi32>
    %c128_i32 = arith.constant 128 : i32
    %38 = vector.broadcast %c128_i32 : i32 to vector<8x128xi32>
    %39 = arith.muli %37, %38 : vector<8x128xi32>
    %40 = arith.addi %39, %11 : vector<8x128xi32>
    %c32_i32 = arith.constant 32 : i32
    %41 = vector.broadcast %c32_i32 : i32 to vector<8x128xi32>
    %42 = arith.cmpi slt, %40, %41 : vector<8x128xi32>
    %cst_15 = arith.constant 0.000000e+00 : f32
    %43 = vector.broadcast %cst_15 : f32 to vector<8x128xf32>
    %44 = arith.select %42, %31, %43 : vector<8x128xi1>, vector<8x128xf32>
    %c0_16 = arith.constant 0 : index
    %c0_17 = arith.constant 0 : index
    %45 = vector.load %arg7[%c0_16, %c0_17] : memref<8x128xf32, #tpu.memory_space<vmem>>, vector<8x128xf32>
    %46 = arith.mulf %3, %4 : vector<8x128xf32>
    %47 = arith.mulf %46, %44 : vector<8x128xf32>
    %48 = arith.addf %45, %47 : vector<8x128xf32>
    %c0_18 = arith.constant 0 : index
    %c0_19 = arith.constant 0 : index
    %49 = vector.load %arg7[%c0_18, %c0_19] : memref<8x128xf32, #tpu.memory_space<vmem>>, vector<8x128xf32>
    tpu.vector_store %arg7[%c0_18, %c0_19], %48 {strides = array<i32>} : memref<8x128xf32, #tpu.memory_space<vmem>>, vector<8x128xf32>,
    %c0_20 = arith.constant 0 : index
    %c0_21 = arith.constant 0 : index
    %50 = vector.load %arg8[%c0_20, %c0_21] : memref<8x128xf32, #tpu.memory_space<vmem>>, vector<8x128xf32>
    %51 = arith.addf %50, %44 : vector<8x128xf32>
    %c0_22 = arith.constant 0 : index
    %c0_23 = arith.constant 0 : index
    %52 = vector.load %arg8[%c0_22, %c0_23] : memref<8x128xf32, #tpu.memory_space<vmem>>, vector<8x128xf32>
    tpu.vector_store %arg8[%c0_22, %c0_23], %51 {strides = array<i32>} : memref<8x128xf32, #tpu.memory_space<vmem>>, vector<8x128xf32>,
    %c0_i32_24 = arith.constant 0 : i32
    %53 = arith.cmpi eq, %arg1, %c0_i32_24 : i32
    %54 = arith.extui %53 : i1 to i32
    %c0_i32_25 = arith.constant 0 : i32
    %55 = arith.cmpi ne, %54, %c0_i32_25 : i32
    scf.if %55 {
      %c0_26 = arith.constant 0 : index
      %c0_27 = arith.constant 0 : index
      %56 = vector.load %arg7[%c0_26, %c0_27] : memref<8x128xf32, #tpu.memory_space<vmem>>, vector<8x128xf32>
      %57 = vector.shape_cast %56 : vector<8x128xf32> to vector<1x8x128xf32>
      %cst_28 = arith.constant dense<0.000000e+00> : vector<1xf32>
      %58 = vector.multi_reduction <add>, %57, %cst_28 [1, 2] : vector<1x8x128xf32> to vector<1xf32>
      %59 = vector.shape_cast %58 : vector<1xf32> to vector<1x1x1xf32>
      %60 = vector.extract %59[0, 0, 0] : f32 from vector<1x1x1xf32>
      %61 = vector.broadcast %60 : f32 to vector<1x8x128xf32>
      %c0_29 = arith.constant 0 : index
      %c0_30 = arith.constant 0 : index
      %c0_31 = arith.constant 0 : index
      %62 = vector.load %arg5[%c0_29, %c0_30, %c0_31] : memref<1x8x128xf32, #tpu.memory_space<vmem>>, vector<1x8x128xf32>
      tpu.vector_store %arg5[%c0_29, %c0_30, %c0_31], %61 {strides = array<i32>} : memref<1x8x128xf32, #tpu.memory_space<vmem>>, vector<1x8x128xf32>,
      %c0_32 = arith.constant 0 : index
      %c0_33 = arith.constant 0 : index
      %63 = vector.load %arg8[%c0_32, %c0_33] : memref<8x128xf32, #tpu.memory_space<vmem>>, vector<8x128xf32>
      %64 = vector.shape_cast %63 : vector<8x128xf32> to vector<1x8x128xf32>
      %cst_34 = arith.constant dense<0.000000e+00> : vector<1xf32>
      %65 = vector.multi_reduction <add>, %64, %cst_34 [1, 2] : vector<1x8x128xf32> to vector<1xf32>
      %66 = vector.shape_cast %65 : vector<1xf32> to vector<1x1x1xf32>
      %67 = vector.extract %66[0, 0, 0] : f32 from vector<1x1x1xf32>
      %68 = vector.broadcast %67 : f32 to vector<1x8x128xf32>
      %c0_35 = arith.constant 0 : index
      %c0_36 = arith.constant 0 : index
      %c0_37 = arith.constant 0 : index
      %69 = vector.load %arg6[%c0_35, %c0_36, %c0_37] : memref<1x8x128xf32, #tpu.memory_space<vmem>>, vector<1x8x128xf32>
      tpu.vector_store %arg6[%c0_35, %c0_36, %c0_37], %68 {strides = array<i32>} : memref<1x8x128xf32, #tpu.memory_space<vmem>>, vector<1x8x128xf32>,
    } else {
    }
    return
  }
  func.func @transform_0(%arg0: i32, %arg1: i32) -> (i32, i32) {
    %c1_i32 = arith.constant 1 : i32
    %0 = arith.muli %arg0, %c1_i32 : i32
    %1 = arith.addi %0, %arg1 : i32
    %c0_i32 = arith.constant 0 : i32
    %c0_i32_0 = arith.constant 0 : i32
    return %1, %c0_i32 : i32, i32
  }
  func.func @transform_1(%arg0: i32, %arg1: i32) -> (i32, i32) {
    %c1_i32 = arith.constant 1 : i32
    %0 = arith.muli %arg0, %c1_i32 : i32
    %1 = arith.addi %0, %arg1 : i32
    %c0_i32 = arith.constant 0 : i32
    %c0_i32_0 = arith.constant 0 : i32
    return %1, %c0_i32 : i32, i32
  }
  func.func @transform_2(%arg0: i32, %arg1: i32) -> (i32, i32) {
    %c1_i32 = arith.constant 1 : i32
    %0 = arith.muli %arg0, %c1_i32 : i32
    %1 = arith.addi %0, %arg1 : i32
    %c0_i32 = arith.constant 0 : i32
    %c0_i32_0 = arith.constant 0 : i32
    return %1, %c0_i32 : i32, i32
  }
  func.func @transform_3(%arg0: i32, %arg1: i32) -> (i32, i32, i32) {
    %c0_i32 = arith.constant 0 : i32
    %c0_i32_0 = arith.constant 0 : i32
    %c0_i32_1 = arith.constant 0 : i32
    return %arg0, %c0_i32, %c0_i32_0 : i32, i32, i32
  }
  func.func @transform_4(%arg0: i32, %arg1: i32) -> (i32, i32, i32) {
    %c0_i32 = arith.constant 0 : i32
    %c0_i32_0 = arith.constant 0 : i32
    %c0_i32_1 = arith.constant 0 : i32
    return %arg0, %c0_i32, %c0_i32_0 : i32, i32, i32
  }
}

</mosaic_0001>

<bundles_post_ra>
// kernel: tpu_custom_call.1
= control target key start
LH: loop header
LB: loop body
LE: loop exit
PB: predicated region body
PF: predicated region fallthrough
CT: control target
= control target key end

     0   :  { %s1226_s0 = inlined_call_operand.hbm [shape: f32[16,128], index: 0, kind: input, shape index: {}]   ;;  %s1227_s1 = inlined_call_operand.hbm [shape: s32[16,128], index: 1, kind: input, shape index: {}]   ;;  %s1228_s2 = inlined_call_operand.hbm [shape: f32[16,128], index: 2, kind: input, shape index: {}]   ;;  %s1229_s3 = inlined_call_operand.hbm [shape: f32[2,8,128], index: 3, kind: output, shape index: {0}]   ;;  %s1230_s4 = inlined_call_operand.hbm [shape: f32[2,8,128], index: 4, kind: output, shape index: {1}]  }
   0x1   :  { %1239 = sst [smem:[#allocation21_spill]] %s1227_s1 }
   0x2   :  { %10 = vsyncpa [#allocation5], 0 }
   0x3   :  { %12 = vsyncpa [#allocation5 + $0x1], 0 }
   0x4   :  { %13 = vsyncpa [#allocation8], 0 }
   0x5   :  { %15 = vsyncpa [#allocation8 + $0x1], 0 }
   0x6   :  { %16 = vsyncpa [#allocation6], 0 }
   0x7   :  { %18 = vsyncpa [#allocation6 + $0x1], 0 }
   0x8   :  { %19 = vsyncpa [#allocation12], 0 }
   0x9   :  { %21 = vsyncpa [#allocation12 + $0x1], 0  ;;  %s931_s15 = smov 0   ;;  %s933_s16 = smov 0  }
   0xa   :  { %s935_s17 = smov 0   ;;  %s937_s18 = smov 0  }
   0xb   :  { %s939_s19 = smov 0   ;;  %s941_s20 = smov 0  }
   0xc LB: > { %1240 = sst [smem:[#allocation17_spill]] %s893_s19  ;;  %s962_s21 = sadd.s32 4294967295, %s897_s20   ;;  %s897_s20 = sphi %s941_s20, %s27_s20   ;;  %s893_s19 = sphi %s939_s19, %s1264_s19   ;;  %s889_s18 = sphi %s937_s18, %s1263_s18   ;;  %s885_s17 = sphi %s935_s17, %s1267_s17   ;;  %s881_s16 = sphi %s933_s16, %s1266_s16   ;;  %s877_s15 = sphi %s931_s15, %s1265_s15  }
   0xd   : > { %1241 = sst [smem:[#allocation18_spill]] %s897_s20  ;;  %s583_s22 = sadd.s32 4294967294, %s897_s20  }
   0xe   : > { %s39_s23 = sadd.s32 1, %s893_s19  ;;  %s48_s24 = sadd.s32 1, %s885_s17 }
   0xf   : > { %p41_p0 = scmp.ge.s32.totalorder %s39_s23, 2  ;;  %p55_p1 = scmp.ne.s32.totalorder %s885_s17, %s881_s16 }
  0x10   : > { %p56_p2 = scmp.eq.s32.totalorder %s897_s20, 0  ;;  %p61_p3 = scmp.ne.s32.totalorder %s881_s16, %s877_s15 }
  0x11   : > { %s1269_s23 = smov (%p41_p0, %s39_s23), 0  ;;  %p62_p5 = scmp.eq.s32.totalorder %s962_s21, 0 }
  0x12   : > { %1242 = sst [smem:[#allocation19_spill]] %s1269_s23  ;;  %p974_p4 = por %p56_p2, %p55_p1 }
  0x13   : > { %s45_s26 = ssub.s32 %s893_s19, %s1269_s23  ;;  %p141_p6 = scmp.eq.s32.totalorder %s962_s21, 1 }
  0x14   : > { %p46_p7 = scmp.eq.s32.totalorder %s45_s26, 0  ;;  %p982_p8 = por %p62_p5, %p61_p3 }
  0x15   : > { %p986_p9 = por %p141_p6, %p55_p1  ;;  %p147_p10 = scmp.eq.s32.totalorder %s583_s22, 1 }
  0x16   : > { %s1244_s27 = scalar_select %p982_p8, 1, 0 }
  0x17   : > { %s1245_s28 = scalar_select %p986_p9, 1, 0 }
  0x18   : > { %s991_s29 = scalar_select %p46_p7, %s885_s17, %s48_s24  }
  0x19   : > { %p993_p11 = por %p147_p10, %p61_p3  ;;  %p637_p13 = scmp.lt.s32.totalorder %s897_s20, 2 }
  0x1a   : > { %1246 = sst [smem:[#allocation20_spill]] %s991_s29  ;;  %s1231_s5 = sand.u32 1, %s885_s17  }
  0x1b   : > { %s1247_s30 = scalar_select %p993_p11, 1, 0 }
  0x1c   : > { %s1002_s6 = sshll.u32 %s1231_s5, 3  ;;  %s1005_s7 = sshll.u32 %s893_s19, 7 }
  0x1d   : > { %p1009_p0 = pnand %p637_p13, %p974_p4  ;;  %s212_s9 = sand.u32 1, %s897_s20  }
  0x1e   : > { %s1249_s1 = sld [smem:[#allocation21_spill]]  ;;  %s216_s13 = scalar_lea.vmem [#allocation7], %s1002_s6 }
  0x1f   : > { %s1248_s8 = scalar_select %p1009_p0, 1, 0 }
  0x20   : > { %s224_s14 = sshll.u32 %s216_s13, 4  ;;  %s1025_s22 = scalar_lea.sflag [#allocation8], %s212_s9  ;;  %s1022_s14 = int_to_ptr.vmem [resolvable:$true] %s224_s14 }
  0x21   : > { %p1031_p4 = pneg %p1009_p0 }
  0x24   : > { %s1018_s12 = scalar_lea.hbm %s1249_s1, %s1005_s7  ;;  %s694_s11 = scalar_lea.hbm %s1249_s1, 256 }
  0x25   : > { %s689_s24 = scalar_lea.hbm %s1018_s12, 128  ;;  %p695_p7 = scmp.lt.u32.totalorder %s1018_s12, %s1249_s1 }
  0x26   : > { %p690_p3 = scmp.ne.s32.totalorder %s1018_s12, %s689_s24  ;;  %p696_p10 = scmp.lt.u32.totalorder %s694_s11, %s689_s24 }
  0x27   : > { %p698_p12 = scmp.lt.u32.totalorder %s689_s24, %s1018_s12 }
  0x28   : > { %p692_p5 = pnand %p1031_p4, %p690_p3  ;;  %p697_p13 = por %p696_p10, %p695_p7 }
  0x2a   : > { %p693_p6 = pneg %p692_p5  ;;  %p699_p1 = por %p698_p12, %p697_p13 }
  0x2c   : > { %p700_p2 = pnand %p699_p1, %p693_p6 }
  0x2e   : > { %703 = shalt.err (!%p700_p2)
}
  0x2f   : > { %s704_s9 = scalar_lea.vmem %s1022_s14, 128  ;;  %s899_s26 = smov [#allocation7]  }
  0x30   : > { %p705_p3 = scmp.ne.s32.totalorder %s1022_s14, %s704_s9  ;;  %s709_s10 = sshll.u32 %s899_s26, 4  ;;  %s710_s10 = int_to_ptr.vmem [resolvable:$false] %s709_s10 }
  0x31   : > { %s711_s5 = scalar_lea.vmem %s710_s10, 256  ;;  %p712_p9 = scmp.lt.s32.totalorder %s1022_s14, %s710_s10 }
  0x32   : > { %p707_p5 = pnand %p705_p3, %p1031_p4  ;;  %p713_p8 = scmp.lt.s32.totalorder %s711_s5, %s704_s9 }
  0x34   : > { %p708_p11 = pneg %p707_p5  ;;  %p714_p7 = por %p713_p8, %p712_p9 }
  0x36   : > { %p715_p10 = pnand %p714_p7, %p708_p11 }
  0x38   : > { %718 = shalt.err (!%p715_p10)
}
  0x39   : > { %626 = dma.hbm_to_vmem [thread:$0]  (!%p1009_p0), %s1018_s12, 128, %s1022_s14, %s1025_s22  }
  0x3a   : > { %p1251_p12 = scmp.lt.s32.totalorder %s897_s20, 3  ;;  %p1252_p1 = scmp.ge.s32.totalorder %s897_s20, 1 }
  0x3b   : > { %s1067_s9 = scalar_lea.hbm %s1226_s0, %s1005_s7  ;;  %s197_s26 = scalar_lea.vmem [#allocation4], %s1002_s6 }
  0x3c   : > { %p1059_p2 = pnand %p1252_p1, %p1251_p12  ;;  %s205_s10 = sshll.u32 %s197_s26, 4  ;;  %s1070_s10 = int_to_ptr.vmem [resolvable:$true] %s205_s10 }
  0x3d   : > { %s1076_s5 = scalar_lea.hbm %s1228_s2, %s1005_s7  ;;  %s1254_s1 = sand.u32 1, %s885_s17  }
  0x3e   : > { %s1253_s24 = scalar_select %p1059_p2, 1, 0 }
  0x3f   : > { %s194_s23 = scalar_lea.sflag [#allocation5], %s1254_s1  ;;  %s719_s19 = scalar_lea.hbm %s1067_s9, 128 }
  0x40   : > { %p720_p8 = scmp.ne.s32.totalorder %s1067_s9, %s719_s19  ;;  %s724_s29 = scalar_lea.hbm %s1226_s0, 256 }
  0x41   : > { %p725_p6 = scmp.lt.u32.totalorder %s1067_s9, %s1226_s0  ;;  %p726_p13 = scmp.lt.u32.totalorder %s724_s29, %s719_s19 }
  0x42   : > { %p722_p9 = pnand %p720_p8, %p1031_p4  ;;  %p728_p5 = scmp.lt.u32.totalorder %s719_s19, %s1067_s9 }
  0x43   : > { %p727_p3 = por %p726_p13, %p725_p6 }
  0x44   : > { %p723_p11 = pneg %p722_p9 }
  0x45   : > { %p729_p7 = por %p728_p5, %p727_p3 }
  0x47   : > { %p730_p10 = pnand %p729_p7, %p723_p11 }
  0x49   : > { %733 = shalt.err (!%p730_p10)
}
  0x4a   : > { %s734_s1 = scalar_lea.vmem %s1070_s10, 128  ;;  %s900_s7 = smov [#allocation4]  }
  0x4b   : > { %p735_p12 = scmp.ne.s32.totalorder %s1070_s10, %s734_s1  ;;  %s739_s12 = sshll.u32 %s900_s7, 4  ;;  %s740_s12 = int_to_ptr.vmem [resolvable:$false] %s739_s12 }
  0x4c   : > { %s741_s20 = scalar_lea.vmem %s740_s12, 256  ;;  %p742_p9 = scmp.lt.s32.totalorder %s1070_s10, %s740_s12 }
  0x4d   : > { %p737_p1 = pnand %p735_p12, %p1031_p4  ;;  %p743_p2 = scmp.lt.s32.totalorder %s741_s20, %s734_s1 }
  0x4f   : > { %p738_p8 = pneg %p737_p1  ;;  %p744_p6 = por %p743_p2, %p742_p9 }
  0x51   : > { %p745_p13 = pnand %p744_p6, %p738_p8 }
  0x53   : > { %748 = shalt.err (!%p745_p13)
}
  0x54   : > { %623 = dma.hbm_to_vmem [thread:$0]  (!%p1009_p0), %s1067_s9, 128, %s1070_s10, %s194_s23  }
  0x55   : > { %s235_s19 = scalar_lea.vmem [#allocation9], %s1002_s6  ;;  %s749_s14 = scalar_lea.hbm %s1076_s5, 128 }
  0x56   : > { %s243_s29 = sshll.u32 %s235_s19, 4  ;;  %p750_p11 = scmp.ne.s32.totalorder %s1076_s5, %s749_s14  ;;  %s244_s29 = int_to_ptr.vmem [resolvable:$true] %s243_s29 }
  0x57   : > { %s754_s26 = scalar_lea.hbm %s1228_s2, 256  ;;  %p755_p5 = scmp.lt.u32.totalorder %s1076_s5, %s1228_s2 }
  0x58   : > { %p752_p2 = pnand %p750_p11, %p1031_p4  ;;  %p756_p7 = scmp.lt.u32.totalorder %s754_s26, %s749_s14 }
  0x59   : > { %p758_p12 = scmp.lt.u32.totalorder %s749_s14, %s1076_s5 }
  0x5a   : > { %p753_p3 = pneg %p752_p2  ;;  %p757_p10 = por %p756_p7, %p755_p5 }
  0x5c   : > { %p759_p1 = por %p758_p12, %p757_p10 }
  0x5e   : > { %p760_p8 = pnand %p759_p1, %p753_p3 }
  0x60   : > { %763 = shalt.err (!%p760_p8)
}
  0x61   : > { %s764_s23 = scalar_lea.vmem %s244_s29, 128  ;;  %s901_s6 = smov [#allocation9]  }
  0x62   : > { %p765_p9 = scmp.ne.s32.totalorder %s244_s29, %s764_s23  ;;  %s769_s9 = sshll.u32 %s901_s6, 4  ;;  %s770_s9 = int_to_ptr.vmem [resolvable:$false] %s769_s9 }
  0x63   : > { %s771_s10 = scalar_lea.vmem %s770_s9, 256  ;;  %p772_p11 = scmp.lt.s32.totalorder %s244_s29, %s770_s9 }
  0x64   : > { %p767_p6 = pnand %p765_p9, %p1031_p4  ;;  %p773_p2 = scmp.lt.s32.totalorder %s771_s10, %s764_s23 }
  0x66   : > { %p768_p13 = pneg %p767_p6  ;;  %p774_p0 = por %p773_p2, %p772_p11 }
  0x68   : > { %p775_p5 = pnand %p774_p0, %p768_p13 }
  0x6a   : > { %778 = shalt.err (!%p775_p5)
}
  0x6b   : > { %p1255_p7 = scmp.ne.s32.totalorder %s1248_s8, 0  ;;  %p1256_p3 = scmp.ne.s32.totalorder %s1253_s24, 0 }
  0x6c   : > { %s1123_s25 = sand.u32 (!%p1256_p3), 1, %s881_s16   ;;  %p1257_p0 = scmp.ne.s32.totalorder (!%p1256_p3), %s1244_s27, 0 }
  0x6d   : > { %629 = dma.hbm_to_vmem [thread:$0]  (!%p1255_p7), %s1076_s5, 128, %s244_s29, %s1025_s22  }
  0x6e   : > { %252 = sbr.rel (%p1256_p3) target bundleno = 486 (0x1e6), region = 32  ;;  %s1126_s12 = sshll.u32 (!%p1256_p3), %s1123_s25, 3 }
  0x6f   : > { %s255_s20 = scalar_lea.sflag (!%p1256_p3), [#allocation5], %s1123_s25  ;;  %s258_s19 = scalar_lea.vmem (!%p1256_p3), [#allocation4], %s1126_s12 }
  0x75   : > { %860 = dma.done.wait (%p1257_p0), %s255_s20, 128  }
  0x76   : > { %862 = vsyncadd (%p1257_p0), %s255_s20, 4294967168  ;;  %s263_s8 = sand.u32 1, %s962_s21   ;;  %s267_s24 = scalar_lea.vmem [#allocation7], %s1126_s12 }
  0x77   : > { %s264_s22 = scalar_lea.sflag [#allocation8], %s263_s8 }
  0x78   : > { %864 = dma.done.wait (%p1257_p0), %s264_s22, 256  }
  0x79   : > { %866 = vsyncadd (%p1257_p0), %s264_s22, 4294967040  ;;  %v327_v0 = vld [vmem:[%s267_s24] sm:$0xff]  ;;  %v902_v1 = vmov 0.0   ;;  %s903_s5 = smov 1   ;;  %v333_v3 = vlaneseq  ;;  %s599_s29 = sshll.u32 %s889_s18, 3  ;;  %v325_v11 = vld [vmem:[%s258_s19] sm:$0xff] }
  0x7a   : > { %vm328_vm0 = vcmp.gt.s32.totalorder %v327_v0, 0  ;;  %v353_v5 = vstv %s599_s29  ;;  %s276_s21 = scalar_lea.vmem [#allocation9], %s1126_s12  ;;  %s315_s27 = scalar_lea.vmem [#allocation11], %s1126_s12 }
  0x7b   : > { %v598_v2 = vsel %vm328_vm0, 1.0, %v902_v1  ;;  %v350_v4 = vshrl.u32 %v333_v3, 7  ;;  %v334_v7 = vand.u32 127, %v333_v3  ;;  %v326_v12 = vld [vmem:[%s276_s21] sm:$0xff]  ;;  %s426_s14 = sshll.u32 %s315_s27, 4  ;;  %s602_s11 = sshll.u32 %s889_s18, 7  ;;  %s1145_s14 = int_to_ptr.vmem [resolvable:$true] %s426_s14 }
  0x7c   : > { %331 = vrot.lane.b32.xlu0 %v598_v2, %s903_s5  ;;  %v360_v13 = vmul.f32 %v326_v12, %v325_v11  ;;  %s308_s13 = scalar_lea.vmem [#allocation10], %s1126_s12  ;;  %s1150_s23 = scalar_lea.hbm %s1229_s3, %s602_s11 }
  0x7d   : > { %v354_v6 = vadd.s32 %v353_v5, %v350_v4  ;;  %v339_v9 = vand.u32 7, %v334_v7  ;;  %s413_s26 = sshll.u32 %s308_s13, 4  ;;  %s1157_s12 = scalar_lea.hbm %s1230_s4, %s602_s11  ;;  %s1152_s26 = int_to_ptr.vmem [resolvable:$true] %s413_s26 }
  0x7e   : > { %s395_s20 = scalar_lea.sflag [#allocation6], %s1123_s25  ;;  %s779_s19 = scalar_lea.vmem %s1152_s26, 128 }
  0x7f   : > { %v355_v8 = vmul.u32 128, %v354_v6  ;;  %vm347_vm1 = vcmp.eq.s32.totalorder %v339_v9, 0  ;;  %p780_p4 = scmp.ne.s32.totalorder %s1152_s26, %s779_s19  ;;  %p1258_p10 = scmp.ne.s32.totalorder %s1245_s28, 0 }
  0x80   : > { %s904_s8 = smov [#allocation10]  }
  0x81   : > { %v356_v10 = vadd.s32 %v355_v8, %v334_v7  ;;  %p781_p12 = pnand %p780_p4, %p1258_p10  ;;  %s783_s22 = sshll.u32 %s904_s8, 4  ;;  %s784_s22 = int_to_ptr.vmem [resolvable:$false] %s783_s22 }
  0x82   : > { %s785_s24 = scalar_lea.vmem %s784_s22, 256  ;;  %p786_p8 = scmp.lt.s32.totalorder %s1152_s26, %s784_s22 }
  0x83   : > { %vm357_vm2 = vcmp.lt.s32.totalorder %v356_v10, 32  ;;  %p782_p1 = pneg %p781_p12  ;;  %p787_p9 = scmp.lt.s32.totalorder %s785_s24, %s779_s19 }
  0x85   : > { %p788_p6 = por %p787_p9, %p786_p8 }
  0x87   : > { %p789_p13 = pnand %p788_p6, %p782_p1 }
  0xee   : > { %v332_v14 = vpop.permute.xlu0 %331 }
  0xef   : > { %v348_v15 = vsel %vm347_vm1, 1.0, %v332_v14 }
  0xf0   : > { %v358_v16 = vsel %vm357_vm2, %v348_v15, 0.0 }
  0xf1   : > { %383 = vadd.xlane.f32.xlu1 %v358_v16  ;;  %v361_v17 = vmul.f32 %v360_v13, %v358_v16 }
  0xf3   : > { %371 = vadd.xlane.f32.xlu0 %v361_v17 }
 0x17e   : > { %v384_v18 = vpop.xlane.xlu1 %383 }
 0x17f   : > { %v385_v19 = vrot.slane %v384_v18, 4 }
 0x180   : > { %v372_v20 = vpop.xlane.xlu0 %371 }
 0x181   : > { %v386_v21 = vadd.f32 %v385_v19, %v384_v18  ;;  %v373_v22 = vrot.slane %v372_v20, 4 }
 0x183   : > { %v387_v23 = vrot.slane %v386_v21, 2  ;;  %v374_v24 = vadd.f32 %v373_v22, %v372_v20 }
 0x185   : > { %v388_v25 = vadd.f32 %v387_v23, %v386_v21  ;;  %v375_v26 = vrot.slane %v374_v24, 2 }
 0x187   : > { %v376_v27 = vadd.f32 %v375_v26, %v374_v24  ;;  %v389_v28 = vrot.slane %v388_v25, 1 }
 0x189   : > { %v377_v29 = vrot.slane %v376_v27, 1  ;;  %v390_v31 = vadd.f32 %v389_v28, %v388_v25 }
 0x18b   : > { %v378_v30 = vadd.f32 %v377_v29, %v376_v27 }
 0x18d   : > { %606 = vpush %v378_v30 }
 0x18e   : > { %608 = vpush %v390_v31 }
 0x1be   : > { %s607_s6 = spop %606 }
 0x1bf   : > { %v380_v32 = vstv %s607_s6  ;;  %s609_s9 = spop %608 }
 0x1c0   : > { %381 = vst [vmem:[%s308_s13] sm:$0xff] %v380_v32  ;;  %v392_v33 = vstv %s609_s9 }
 0x1c1   : > { %393 = vst [vmem:[%s315_s27] sm:$0xff] %v392_v33 }
 0x1c2   : > { %792 = shalt.err (!%p789_p13)
}
 0x1c3   : > { %s793_s5 = scalar_lea.hbm %s1150_s23, 128  ;;  %s797_s27 = scalar_lea.hbm %s1229_s3, 256 }
 0x1c4   : > { %p794_p11 = scmp.ne.s32.totalorder %s1150_s23, %s793_s5  ;;  %p798_p7 = scmp.lt.u32.totalorder %s1150_s23, %s1229_s3 }
 0x1c5   : > { %p799_p3 = scmp.lt.u32.totalorder %s797_s27, %s793_s5  ;;  %p801_p4 = scmp.lt.u32.totalorder %s793_s5, %s1150_s23 }
 0x1c6   : > { %p795_p2 = pnand %p794_p11, %p1258_p10 }
 0x1c7   : > { %p800_p0 = por %p799_p3, %p798_p7 }
 0x1c8   : > { %p796_p5 = pneg %p795_p2 }
 0x1c9   : > { %p802_p12 = por %p801_p4, %p800_p0 }
 0x1cb   : > { %p803_p1 = pnand %p802_p12, %p796_p5 }
 0x1cd   : > { %806 = shalt.err (!%p803_p1)
}
 0x1ce   : > { %616 = dma.vmem_to_hbm [thread:$0]  (%p1258_p10), %s1152_s26, 128, %s1150_s23, %s395_s20  }
 0x1cf   : > { %s400_s1 = scalar_lea.sflag [#allocation12], %s1123_s25  ;;  %s807_s7 = scalar_lea.vmem %s1145_s14, 128 }
 0x1d0   : > { %p808_p8 = scmp.ne.s32.totalorder %s1145_s14, %s807_s7  ;;  %s905_s6 = smov [#allocation11]  }
 0x1d1   : > { %s811_s9 = sshll.u32 %s905_s6, 4  ;;  %s812_s9 = int_to_ptr.vmem [resolvable:$false] %s811_s9 }
 0x1d2   : > { %p809_p9 = pnand %p808_p8, %p1258_p10  ;;  %s813_s10 = scalar_lea.vmem %s812_s9, 256 }
 0x1d3   : > { %p814_p13 = scmp.lt.s32.totalorder %s1145_s14, %s812_s9  ;;  %p815_p11 = scmp.lt.s32.totalorder %s813_s10, %s807_s7 }
 0x1d4   : > { %p810_p6 = pneg %p809_p9 }
 0x1d5   : > { %p816_p2 = por %p815_p11, %p814_p13 }
 0x1d7   : > { %p817_p5 = pnand %p816_p2, %p810_p6 }
 0x1d9   : > { %820 = shalt.err (!%p817_p5)
}
 0x1da   : > { %s821_s25 = scalar_lea.hbm %s1157_s12, 128  ;;  %s825_s18 = scalar_lea.hbm %s1230_s4, 256 }
 0x1db   : > { %p822_p7 = scmp.ne.s32.totalorder %s1157_s12, %s821_s25  ;;  %p826_p4 = scmp.lt.u32.totalorder %s1157_s12, %s1230_s4 }
 0x1dc   : > { %p827_p12 = scmp.lt.u32.totalorder %s825_s18, %s821_s25  ;;  %p829_p8 = scmp.lt.u32.totalorder %s821_s25, %s1157_s12 }
 0x1dd   : > { %p823_p3 = pnand %p822_p7, %p1258_p10 }
 0x1de   : > { %p828_p1 = por %p827_p12, %p826_p4 }
 0x1df   : > { %p824_p0 = pneg %p823_p3 }
 0x1e0   : > { %p830_p9 = por %p829_p8, %p828_p1 }
 0x1e2   : > { %p831_p6 = pnand %p830_p9, %p824_p0 }
 0x1e4   : > { %834 = shalt.err (!%p831_p6)
}
 0x1e5   : > { %617 = dma.vmem_to_hbm [thread:$0]  (%p1258_p10), %s1145_s14, 128, %s1157_s12, %s400_s1  }
 0x1e6 PF: > { %s1259_s8 = sld [smem:[#allocation18_spill]]  ;;  %s438_s22 = sand.u32 1, %s877_s15  }
 0x1e7   : > { %p1260_p13 = scmp.ne.s32.totalorder %s1247_s30, 0  ;;  %s439_s24 = scalar_lea.sflag [#allocation6], %s438_s22 }
 0x1ec   : > { %p1261_p11 = scmp.ge.s32.totalorder %s1259_s8, 2 }
 0x1ee   : > { %p631_p2 = pnand %p1261_p11, %p1260_p13 }
 0x1f0   : > { %868 = dma.done.wait (!%p631_p2), %s439_s24, 128  }
 0x1f1   : > { %870 = vsyncadd (!%p631_p2), %s439_s24, 4294967168  ;;  %s448_s5 = scalar_lea.sflag [#allocation12], %s438_s22 }
 0x1f2   : > { %872 = dma.done.wait (!%p631_p2), %s448_s5, 128  }
 0x1f3   : > { %874 = vsyncadd (!%p631_p2), %s448_s5, 4294967168  ;;  %s27_s20 = sadd.s32 1, %s1259_s8   ;;  %s1262_s28 = sld [smem:[#allocation20_spill]] }
 0x1f4   : > { %p24_p5 = scmp.ge.s32.totalorder %s27_s20, 4   ;;  %s1263_s18 = sld [smem:[#allocation17_spill]] }
 0x1f5   : > { %s1264_s19 = sld [smem:[#allocation19_spill]]  ;;  %s1265_s15 = smov %s881_s16 }
 0x1f6   : > { %s1266_s16 = smov %s885_s17  ;;  %26 = sbr.rel (!%p24_p5) target bundleno = 12 (0xc), region = 126 }
 0x1f9   : > { %s1267_s17 = smov %s1262_s28 }
 0x1fd   :  { %453 = vsyncpa [#allocation5], 1 }
 0x1fe   :  { %455 = vsyncpa [#allocation5 + $0x1], 1 }
 0x1ff   :  { %456 = vsyncpa [#allocation8], 1 }
 0x200   :  { %458 = vsyncpa [#allocation8 + $0x1], 1 }
 0x201   :  { %459 = vsyncpa [#allocation6], 1 }
 0x202   :  { %461 = vsyncpa [#allocation6 + $0x1], 1 }
 0x203   :  { %462 = vsyncpa [#allocation12], 1 }
 0x204   :  { %464 = vsyncpa [#allocation12 + $0x1], 1 }

</bundles_post_ra>
